<compile_context>
chip_gen: v7x
topology: tpu7x:2x2x1
jax: 0.10.0
libtpu: 0.0.40
codegen_flags: <defaults>
</compile_context>

<pallas_src>
import functools
import math

import jax
import jax.numpy as jnp
import numpy as np
from jax.experimental import pallas as pl
from jax.experimental.pallas import tpu as pltpu

SIG2 = 0.01                       # prior sigma in KL_2gaussian(.., 0, 0.01)
LOG_SIG2 = math.log(SIG2)
INV_SIG2_SQ = 1.0 / (SIG2 * SIG2)  # == 1e4 (compile-time constant, no per-element divide)
PAD_SIGMA = SIG2                  # padding (mu=0, sigma=0.01): KL term == 0.5 exactly
DPAD = 32                         # padded in/out width for every layer
KL_LANE = 2                       # final layer has 2 real outputs -> lane 2 is free


def enn_kernel(x_ref, w_ref, b_ref, out_ref, *, inv_denom, pad_correction):
    """x_ref: (TB,1); w_ref: (12,32,32); b_ref: (12,1,32); out_ref: (TB,32).

    Plane index = 3*layer + field, field: 0=mu, 1=sigma, 2=prior.
    """
    x = x_ref[...]                                                   # (TB, 1)

    def reparam_w(k):
        return w_ref[3 * k + 1] * w_ref[3 * k + 2] + w_ref[3 * k]    # (32, 32)

    def reparam_b(k):
        return b_ref[3 * k + 1] * b_ref[3 * k + 2] + b_ref[3 * k]    # (1, 32)

    # ----- layer 1 (in=1): only row 0 of the padded weight plane is real -----
    w1 = reparam_w(0)[0:1, :]                                        # (1, 32)
    b1 = reparam_b(0)                                                # (1, 32)
    h = jnp.maximum(x * w1 + b1, 0.0)                                # relu, VPU broadcast

    # ----- layer 2 -----
    h = jnp.dot(h, reparam_w(1), preferred_element_type=jnp.float32) + reparam_b(1)
    h = 1.0 / (1.0 + jnp.exp(-h))                                    # sigmoid

    # ----- layer 3 (no activation) -----
    h = jnp.dot(h, reparam_w(2), preferred_element_type=jnp.float32) + reparam_b(2)

    # ----- layer 4 (out padded 2 -> 32; padded columns come out exactly 0) -----
    out = jnp.dot(h, reparam_w(3), preferred_element_type=jnp.float32) + reparam_b(3)

    # ----- KL: divide-free terms, one lane-wise accumulator, two reductions total -----
    def kl_term(mu, sig):
        return (LOG_SIG2 - jnp.log(jnp.abs(sig))) + (sig * sig + mu * mu) * INV_SIG2_SQ - 0.5

    klw = kl_term(w_ref[0], w_ref[1])                                # (32, 32)
    klb = kl_term(b_ref[0], b_ref[1])                                # (1, 32)
    for k in (1, 2, 3):
        klw = klw + kl_term(w_ref[3 * k], w_ref[3 * k + 1])
        klb = klb + kl_term(b_ref[3 * k], b_ref[3 * k + 1])
    kl_sum = jnp.sum(klw, keepdims=True) + jnp.sum(klb, keepdims=True)   # (1, 1)
    kl = (kl_sum - pad_correction) * inv_denom                            # (1, 1)

    # ----- single merged, lane-dense store: forward in lanes 0..1, KL in lane 2 -----
    col = jax.lax.broadcasted_iota(jnp.int32, out.shape, 1)
    out_ref[...] = jnp.where(col == KL_LANE, kl, out)


def enn_forward(x_batch, params, priors, l1, l2, l3):
    """x_batch: (B,) scalars; params: 4x(w_mu,w_sigma,b_mu,b_sigma); priors: 4x(w_prior,b_prior)."""
    assert max(l1, l2, l3, 2) <= DPAD
    denom = 2.0 * (l1 + l1 + l2 + l2 * l1 + l3 + l3 * l2)

    # ---- pack all 24 parameter arrays into two padded slabs (host-side layout glue) ----
    w_planes, b_planes, n_pad = [], [], 0
    for (wm, ws, bm, bs), (wp, bp) in zip(params, priors):
        ins, outs = wm.shape
        n_pad += (DPAD * DPAD - ins * outs) + (DPAD - outs)
        for arr, fill in ((wm, 0.0), (ws, PAD_SIGMA), (wp, 0.0)):
            w_planes.append(jnp.full((DPAD, DPAD), fill, jnp.float32).at[:ins, :outs].set(arr))
        for arr, fill in ((bm, 0.0), (bs, PAD_SIGMA), (bp, 0.0)):
            b_planes.append(jnp.full((1, DPAD), fill, jnp.float32).at[:, :outs].set(arr))
    w_all = jnp.stack(w_planes)                     # (12, 32, 32)
    b_all = jnp.stack(b_planes)                     # (12, 1, 32)
    pad_correction = 0.5 * n_pad                    # each padded (0, 0.01) element adds 0.5

    # ---- batch handling: one pallas_call over all samples; grid only for large B ----
    x2d = jnp.asarray(x_batch, jnp.float32).reshape(-1, 1)
    b_sz = x2d.shape[0]
    tb = b_sz if b_sz <= 128 else 128
    n_rows = ((b_sz + tb - 1) // tb) * tb
    if n_rows != b_sz:
        x2d = jnp.pad(x2d, ((0, n_rows - b_sz), (0, 0)))
    grid = (n_rows // tb,)

    kernel = functools.partial(enn_kernel, inv_denom=1.0 / denom,
                               pad_correction=pad_correction)
    res = pl.pallas_call(
        kernel,
        out_shape=jax.ShapeDtypeStruct((n_rows, DPAD), jnp.float32),
        grid=grid,
        in_specs=[
            pl.BlockSpec((tb, 1), lambda i: (i, 0)),
            pl.BlockSpec((12, DPAD, DPAD), lambda i: (0, 0, 0)),
            pl.BlockSpec((12, 1, DPAD), lambda i: (0, 0, 0)),
        ],
        out_specs=pl.BlockSpec((tb, DPAD), lambda i: (i, 0)),
        compiler_params=pltpu.CompilerParams(dimension_semantics=("parallel",)),
    )(x2d, w_all, b_all)

    out = res[:b_sz, :2]
    kl = res[0, KL_LANE]
    return out, kl


def ref_forward(x_batch, params, priors, l1, l2, l3):
    """Pure-JAX reference mirroring the PyTorch forward (float32), batched over rows."""
    def kl_sum(mu, sig):
        return jnp.sum(jnp.log(SIG2 / jnp.abs(sig)) + (sig**2 + mu**2) / (SIG2**2) - 0.5)

    h = jnp.asarray(x_batch, jnp.float32).reshape(-1, 1)
    acts = [jax.nn.relu, jax.nn.sigmoid, lambda a: a, lambda a: a]
    kl = jnp.float32(0.0)
    for (wm, ws, bm, bs), (wp, bp), act in zip(params, priors, acts):
        w = ws * wp + wm
        b = bs * bp + bm
        h = act(h @ w + b)
        kl = kl + kl_sum(wm, ws) + kl_sum(bm, bs)
    kl = kl / 2.0 / (l1 + l1 + l2 + l2 * l1 + l3 + l3 * l2)
    return h, kl


if __name__ == "__main__":
    key = jax.random.PRNGKey(0)
    l1 = l2 = l3 = 32            # hidden widths (l4 is unused by the reference forward)
    z_mu, z_sigma = 0.0, 1.0     # prior sampling params of the ENN module

    layer_dims = [(1, l1), (l1, l2), (l2, l3), (l3, 2)]
    params, priors = [], []
    for ins, outs in layer_dims:
        key, k1, k2, k3, k4, k5, k6 = jax.random.split(key, 7)
        wm = jax.random.normal(k1, (ins, outs), jnp.float32)
        ws = jax.random.normal(k2, (ins, outs), jnp.float32)
        bm = jax.random.normal(k3, (1, outs), jnp.float32)
        bs = jax.random.normal(k4, (1, outs), jnp.float32)
        # priors sampled deterministically here (glue for torch.normal); the reparam
        # w = sigma*prior + mu, matmuls, activations and KL all run inside the kernel.
        wp = z_mu + z_sigma * jax.random.normal(k5, (ins, outs), jnp.float32)
        bp = z_mu + z_sigma * jax.random.normal(k6, (1, outs), jnp.float32)
        params.append((wm, ws, bm, bs))
        priors.append((wp, bp))

    # Batch of scalar inputs (first one mirrors `a = 1` in the reference script).
    B = 8
    x_batch = jnp.concatenate([jnp.array([1.0], jnp.float32),
                               jnp.linspace(-10.0, 20.0, B - 1, dtype=jnp.float32)])

    out, kl = enn_forward(x_batch, params, priors, l1, l2, l3)
    jax.block_until_ready((out, kl))

    out_ref, kl_ref = ref_forward(x_batch, params, priors, l1, l2, l3)
    np.testing.assert_allclose(np.asarray(out), np.asarray(out_ref), rtol=1e-2, atol=1e-2)
    np.testing.assert_allclose(np.asarray(kl), np.asarray(kl_ref), rtol=1e-2, atol=1e-2)

    print("KERNEL_OK")
</pallas_src>

<mosaic_0001>
module attributes {stable_mosaic.version = 11 : i64} {
  func.func @enn_kernel(%arg0: i32, %arg1: memref<8x1xf32, #tpu.memory_space<vmem>>, %arg2: memref<12x32x32xf32, #tpu.memory_space<vmem>>, %arg3: memref<12x1x32xf32, #tpu.memory_space<vmem>>, %arg4: memref<8x32xf32, #tpu.memory_space<vmem>>) attributes {dimension_semantics = [#tpu.dimension_semantics<parallel>], iteration_bounds = array<i64: 1>, scalar_prefetch = 0 : i64, scratch_operands = 0 : i64, tpu.core_type = #tpu.core_type<tc>, window_params = [{transform_indices = @transform_0, window_bounds = array<i64: 8, 1>}, {pipeline_mode = #tpu.pipeline_mode<synchronous>, transform_indices = @transform_1, window_bounds = array<i64: 12, 32, 32>}, {pipeline_mode = #tpu.pipeline_mode<synchronous>, transform_indices = @transform_2, window_bounds = array<i64: 12, 1, 32>}, {transform_indices = @transform_3, window_bounds = array<i64: 8, 32>}]} {
    %c0 = arith.constant 0 : index
    %c0_0 = arith.constant 0 : index
    %0 = vector.load %arg1[%c0, %c0_0] : memref<8x1xf32, #tpu.memory_space<vmem>>, vector<8x1xf32>
    %c1 = arith.constant 1 : index
    %c0_1 = arith.constant 0 : index
    %c0_2 = arith.constant 0 : index
    %1 = vector.load %arg2[%c1, %c0_1, %c0_2] : memref<12x32x32xf32, #tpu.memory_space<vmem>>, vector<1x32x32xf32>
    %2 = vector.shape_cast %1 : vector<1x32x32xf32> to vector<32x32xf32>
    %c2 = arith.constant 2 : index
    %c0_3 = arith.constant 0 : index
    %c0_4 = arith.constant 0 : index
    %3 = vector.load %arg2[%c2, %c0_3, %c0_4] : memref<12x32x32xf32, #tpu.memory_space<vmem>>, vector<1x32x32xf32>
    %4 = vector.shape_cast %3 : vector<1x32x32xf32> to vector<32x32xf32>
    %5 = arith.mulf %2, %4 : vector<32x32xf32>
    %c0_5 = arith.constant 0 : index
    %c0_6 = arith.constant 0 : index
    %c0_7 = arith.constant 0 : index
    %6 = vector.load %arg2[%c0_5, %c0_6, %c0_7] : memref<12x32x32xf32, #tpu.memory_space<vmem>>, vector<1x32x32xf32>
    %7 = vector.shape_cast %6 : vector<1x32x32xf32> to vector<32x32xf32>
    %8 = arith.addf %5, %7 : vector<32x32xf32>
    %9 = vector.extract_strided_slice %8 {offsets = [0, 0], sizes = [1, 32], strides = [1, 1]} : vector<32x32xf32> to vector<1x32xf32>
    %c1_8 = arith.constant 1 : index
    %c0_9 = arith.constant 0 : index
    %c0_10 = arith.constant 0 : index
    %10 = vector.load %arg3[%c1_8, %c0_9, %c0_10] : memref<12x1x32xf32, #tpu.memory_space<vmem>>, vector<1x1x32xf32>
    %11 = vector.shape_cast %10 : vector<1x1x32xf32> to vector<1x32xf32>
    %c2_11 = arith.constant 2 : index
    %c0_12 = arith.constant 0 : index
    %c0_13 = arith.constant 0 : index
    %12 = vector.load %arg3[%c2_11, %c0_12, %c0_13] : memref<12x1x32xf32, #tpu.memory_space<vmem>>, vector<1x1x32xf32>
    %13 = vector.shape_cast %12 : vector<1x1x32xf32> to vector<1x32xf32>
    %14 = arith.mulf %11, %13 : vector<1x32xf32>
    %c0_14 = arith.constant 0 : index
    %c0_15 = arith.constant 0 : index
    %c0_16 = arith.constant 0 : index
    %15 = vector.load %arg3[%c0_14, %c0_15, %c0_16] : memref<12x1x32xf32, #tpu.memory_space<vmem>>, vector<1x1x32xf32>
    %16 = vector.shape_cast %15 : vector<1x1x32xf32> to vector<1x32xf32>
    %17 = arith.addf %14, %16 : vector<1x32xf32>
    %18 = vector.broadcast %0 : vector<8x1xf32> to vector<8x32xf32>
    %19 = vector.broadcast %9 : vector<1x32xf32> to vector<8x32xf32>
    %20 = arith.mulf %18, %19 : vector<8x32xf32>
    %21 = vector.broadcast %17 : vector<1x32xf32> to vector<8x32xf32>
    %22 = arith.addf %20, %21 : vector<8x32xf32>
    %cst = arith.constant 0.000000e+00 : f32
    %23 = vector.broadcast %cst : f32 to vector<8x32xf32>
    %24 = arith.maximumf %22, %23 : vector<8x32xf32>
    %c4 = arith.constant 4 : index
    %c0_17 = arith.constant 0 : index
    %c0_18 = arith.constant 0 : index
    %25 = vector.load %arg2[%c4, %c0_17, %c0_18] : memref<12x32x32xf32, #tpu.memory_space<vmem>>, vector<1x32x32xf32>
    %26 = vector.shape_cast %25 : vector<1x32x32xf32> to vector<32x32xf32>
    %c5 = arith.constant 5 : index
    %c0_19 = arith.constant 0 : index
    %c0_20 = arith.constant 0 : index
    %27 = vector.load %arg2[%c5, %c0_19, %c0_20] : memref<12x32x32xf32, #tpu.memory_space<vmem>>, vector<1x32x32xf32>
    %28 = vector.shape_cast %27 : vector<1x32x32xf32> to vector<32x32xf32>
    %29 = arith.mulf %26, %28 : vector<32x32xf32>
    %c3 = arith.constant 3 : index
    %c0_21 = arith.constant 0 : index
    %c0_22 = arith.constant 0 : index
    %30 = vector.load %arg2[%c3, %c0_21, %c0_22] : memref<12x32x32xf32, #tpu.memory_space<vmem>>, vector<1x32x32xf32>
    %31 = vector.shape_cast %30 : vector<1x32x32xf32> to vector<32x32xf32>
    %32 = arith.addf %29, %31 : vector<32x32xf32>
    %cst_23 = arith.constant dense<0.000000e+00> : vector<8x32xf32>
    %33 = tpu.matmul %24, %32, %cst_23 {dimension_numbers = #tpu.dot_dimension_numbers<[1], [0], [0], [1], [0, 0, 1, 1], [], []>} : vector<8x32xf32>, vector<32x32xf32>, vector<8x32xf32> -> vector<8x32xf32>
    %c4_24 = arith.constant 4 : index
    %c0_25 = arith.constant 0 : index
    %c0_26 = arith.constant 0 : index
    %34 = vector.load %arg3[%c4_24, %c0_25, %c0_26] : memref<12x1x32xf32, #tpu.memory_space<vmem>>, vector<1x1x32xf32>
    %35 = vector.shape_cast %34 : vector<1x1x32xf32> to vector<1x32xf32>
    %c5_27 = arith.constant 5 : index
    %c0_28 = arith.constant 0 : index
    %c0_29 = arith.constant 0 : index
    %36 = vector.load %arg3[%c5_27, %c0_28, %c0_29] : memref<12x1x32xf32, #tpu.memory_space<vmem>>, vector<1x1x32xf32>
    %37 = vector.shape_cast %36 : vector<1x1x32xf32> to vector<1x32xf32>
    %38 = arith.mulf %35, %37 : vector<1x32xf32>
    %c3_30 = arith.constant 3 : index
    %c0_31 = arith.constant 0 : index
    %c0_32 = arith.constant 0 : index
    %39 = vector.load %arg3[%c3_30, %c0_31, %c0_32] : memref<12x1x32xf32, #tpu.memory_space<vmem>>, vector<1x1x32xf32>
    %40 = vector.shape_cast %39 : vector<1x1x32xf32> to vector<1x32xf32>
    %41 = arith.addf %38, %40 : vector<1x32xf32>
    %42 = vector.broadcast %41 : vector<1x32xf32> to vector<8x32xf32>
    %43 = arith.addf %33, %42 : vector<8x32xf32>
    %cst_33 = arith.constant 0.000000e+00 : f32
    %44 = vector.broadcast %cst_33 : f32 to vector<8x32xf32>
    %45 = arith.subf %44, %43 : vector<8x32xf32>
    %46 = math.exp %45 : vector<8x32xf32>
    %cst_34 = arith.constant 1.000000e+00 : f32
    %47 = vector.broadcast %cst_34 : f32 to vector<8x32xf32>
    %48 = arith.addf %47, %46 : vector<8x32xf32>
    %cst_35 = arith.constant 1.000000e+00 : f32
    %49 = vector.broadcast %cst_35 : f32 to vector<8x32xf32>
    %50 = arith.divf %49, %48 : vector<8x32xf32>
    %c7 = arith.constant 7 : index
    %c0_36 = arith.constant 0 : index
    %c0_37 = arith.constant 0 : index
    %51 = vector.load %arg2[%c7, %c0_36, %c0_37] : memref<12x32x32xf32, #tpu.memory_space<vmem>>, vector<1x32x32xf32>
    %52 = vector.shape_cast %51 : vector<1x32x32xf32> to vector<32x32xf32>
    %c8 = arith.constant 8 : index
    %c0_38 = arith.constant 0 : index
    %c0_39 = arith.constant 0 : index
    %53 = vector.load %arg2[%c8, %c0_38, %c0_39] : memref<12x32x32xf32, #tpu.memory_space<vmem>>, vector<1x32x32xf32>
    %54 = vector.shape_cast %53 : vector<1x32x32xf32> to vector<32x32xf32>
    %55 = arith.mulf %52, %54 : vector<32x32xf32>
    %c6 = arith.constant 6 : index
    %c0_40 = arith.constant 0 : index
    %c0_41 = arith.constant 0 : index
    %56 = vector.load %arg2[%c6, %c0_40, %c0_41] : memref<12x32x32xf32, #tpu.memory_space<vmem>>, vector<1x32x32xf32>
    %57 = vector.shape_cast %56 : vector<1x32x32xf32> to vector<32x32xf32>
    %58 = arith.addf %55, %57 : vector<32x32xf32>
    %cst_42 = arith.constant dense<0.000000e+00> : vector<8x32xf32>
    %59 = tpu.matmul %50, %58, %cst_42 {dimension_numbers = #tpu.dot_dimension_numbers<[1], [0], [0], [1], [0, 0, 1, 1], [], []>} : vector<8x32xf32>, vector<32x32xf32>, vector<8x32xf32> -> vector<8x32xf32>
    %c7_43 = arith.constant 7 : index
    %c0_44 = arith.constant 0 : index
    %c0_45 = arith.constant 0 : index
    %60 = vector.load %arg3[%c7_43, %c0_44, %c0_45] : memref<12x1x32xf32, #tpu.memory_space<vmem>>, vector<1x1x32xf32>
    %61 = vector.shape_cast %60 : vector<1x1x32xf32> to vector<1x32xf32>
    %c8_46 = arith.constant 8 : index
    %c0_47 = arith.constant 0 : index
    %c0_48 = arith.constant 0 : index
    %62 = vector.load %arg3[%c8_46, %c0_47, %c0_48] : memref<12x1x32xf32, #tpu.memory_space<vmem>>, vector<1x1x32xf32>
    %63 = vector.shape_cast %62 : vector<1x1x32xf32> to vector<1x32xf32>
    %64 = arith.mulf %61, %63 : vector<1x32xf32>
    %c6_49 = arith.constant 6 : index
    %c0_50 = arith.constant 0 : index
    %c0_51 = arith.constant 0 : index
    %65 = vector.load %arg3[%c6_49, %c0_50, %c0_51] : memref<12x1x32xf32, #tpu.memory_space<vmem>>, vector<1x1x32xf32>
    %66 = vector.shape_cast %65 : vector<1x1x32xf32> to vector<1x32xf32>
    %67 = arith.addf %64, %66 : vector<1x32xf32>
    %68 = vector.broadcast %67 : vector<1x32xf32> to vector<8x32xf32>
    %69 = arith.addf %59, %68 : vector<8x32xf32>
    %c10 = arith.constant 10 : index
    %c0_52 = arith.constant 0 : index
    %c0_53 = arith.constant 0 : index
    %70 = vector.load %arg2[%c10, %c0_52, %c0_53] : memref<12x32x32xf32, #tpu.memory_space<vmem>>, vector<1x32x32xf32>
    %71 = vector.shape_cast %70 : vector<1x32x32xf32> to vector<32x32xf32>
    %c11 = arith.constant 11 : index
    %c0_54 = arith.constant 0 : index
    %c0_55 = arith.constant 0 : index
    %72 = vector.load %arg2[%c11, %c0_54, %c0_55] : memref<12x32x32xf32, #tpu.memory_space<vmem>>, vector<1x32x32xf32>
    %73 = vector.shape_cast %72 : vector<1x32x32xf32> to vector<32x32xf32>
    %74 = arith.mulf %71, %73 : vector<32x32xf32>
    %c9 = arith.constant 9 : index
    %c0_56 = arith.constant 0 : index
    %c0_57 = arith.constant 0 : index
    %75 = vector.load %arg2[%c9, %c0_56, %c0_57] : memref<12x32x32xf32, #tpu.memory_space<vmem>>, vector<1x32x32xf32>
    %76 = vector.shape_cast %75 : vector<1x32x32xf32> to vector<32x32xf32>
    %77 = arith.addf %74, %76 : vector<32x32xf32>
    %cst_58 = arith.constant dense<0.000000e+00> : vector<8x32xf32>
    %78 = tpu.matmul %69, %77, %cst_58 {dimension_numbers = #tpu.dot_dimension_numbers<[1], [0], [0], [1], [0, 0, 1, 1], [], []>} : vector<8x32xf32>, vector<32x32xf32>, vector<8x32xf32> -> vector<8x32xf32>
    %c10_59 = arith.constant 10 : index
    %c0_60 = arith.constant 0 : index
    %c0_61 = arith.constant 0 : index
    %79 = vector.load %arg3[%c10_59, %c0_60, %c0_61] : memref<12x1x32xf32, #tpu.memory_space<vmem>>, vector<1x1x32xf32>
    %80 = vector.shape_cast %79 : vector<1x1x32xf32> to vector<1x32xf32>
    %c11_62 = arith.constant 11 : index
    %c0_63 = arith.constant 0 : index
    %c0_64 = arith.constant 0 : index
    %81 = vector.load %arg3[%c11_62, %c0_63, %c0_64] : memref<12x1x32xf32, #tpu.memory_space<vmem>>, vector<1x1x32xf32>
    %82 = vector.shape_cast %81 : vector<1x1x32xf32> to vector<1x32xf32>
    %83 = arith.mulf %80, %82 : vector<1x32xf32>
    %c9_65 = arith.constant 9 : index
    %c0_66 = arith.constant 0 : index
    %c0_67 = arith.constant 0 : index
    %84 = vector.load %arg3[%c9_65, %c0_66, %c0_67] : memref<12x1x32xf32, #tpu.memory_space<vmem>>, vector<1x1x32xf32>
    %85 = vector.shape_cast %84 : vector<1x1x32xf32> to vector<1x32xf32>
    %86 = arith.addf %83, %85 : vector<1x32xf32>
    %87 = vector.broadcast %86 : vector<1x32xf32> to vector<8x32xf32>
    %88 = arith.addf %78, %87 : vector<8x32xf32>
    %c0_68 = arith.constant 0 : index
    %c0_69 = arith.constant 0 : index
    %c0_70 = arith.constant 0 : index
    %89 = vector.load %arg2[%c0_68, %c0_69, %c0_70] : memref<12x32x32xf32, #tpu.memory_space<vmem>>, vector<1x32x32xf32>
    %90 = vector.shape_cast %89 : vector<1x32x32xf32> to vector<32x32xf32>
    %c1_71 = arith.constant 1 : index
    %c0_72 = arith.constant 0 : index
    %c0_73 = arith.constant 0 : index
    %91 = vector.load %arg2[%c1_71, %c0_72, %c0_73] : memref<12x32x32xf32, #tpu.memory_space<vmem>>, vector<1x32x32xf32>
    %92 = vector.shape_cast %91 : vector<1x32x32xf32> to vector<32x32xf32>
    %93 = math.absf %92 : vector<32x32xf32>
    %94 = math.log %93 : vector<32x32xf32>
    %cst_74 = arith.constant -4.60517025 : f32
    %95 = vector.broadcast %cst_74 : f32 to vector<32x32xf32>
    %96 = arith.subf %95, %94 : vector<32x32xf32>
    %97 = arith.mulf %92, %92 : vector<32x32xf32>
    %98 = arith.mulf %90, %90 : vector<32x32xf32>
    %99 = arith.addf %97, %98 : vector<32x32xf32>
    %cst_75 = arith.constant 1.000000e+04 : f32
    %100 = vector.broadcast %cst_75 : f32 to vector<32x32xf32>
    %101 = arith.mulf %99, %100 : vector<32x32xf32>
    %102 = arith.addf %96, %101 : vector<32x32xf32>
    %cst_76 = arith.constant 5.000000e-01 : f32
    %103 = vector.broadcast %cst_76 : f32 to vector<32x32xf32>
    %104 = arith.subf %102, %103 : vector<32x32xf32>
    %c0_77 = arith.constant 0 : index
    %c0_78 = arith.constant 0 : index
    %c0_79 = arith.constant 0 : index
    %105 = vector.load %arg3[%c0_77, %c0_78, %c0_79] : memref<12x1x32xf32, #tpu.memory_space<vmem>>, vector<1x1x32xf32>
    %106 = vector.shape_cast %105 : vector<1x1x32xf32> to vector<1x32xf32>
    %c1_80 = arith.constant 1 : index
    %c0_81 = arith.constant 0 : index
    %c0_82 = arith.constant 0 : index
    %107 = vector.load %arg3[%c1_80, %c0_81, %c0_82] : memref<12x1x32xf32, #tpu.memory_space<vmem>>, vector<1x1x32xf32>
    %108 = vector.shape_cast %107 : vector<1x1x32xf32> to vector<1x32xf32>
    %109 = math.absf %108 : vector<1x32xf32>
    %110 = math.log %109 : vector<1x32xf32>
    %cst_83 = arith.constant -4.60517025 : f32
    %111 = vector.broadcast %cst_83 : f32 to vector<1x32xf32>
    %112 = arith.subf %111, %110 : vector<1x32xf32>
    %113 = arith.mulf %108, %108 : vector<1x32xf32>
    %114 = arith.mulf %106, %106 : vector<1x32xf32>
    %115 = arith.addf %113, %114 : vector<1x32xf32>
    %cst_84 = arith.constant 1.000000e+04 : f32
    %116 = vector.broadcast %cst_84 : f32 to vector<1x32xf32>
    %117 = arith.mulf %115, %116 : vector<1x32xf32>
    %118 = arith.addf %112, %117 : vector<1x32xf32>
    %cst_85 = arith.constant 5.000000e-01 : f32
    %119 = vector.broadcast %cst_85 : f32 to vector<1x32xf32>
    %120 = arith.subf %118, %119 : vector<1x32xf32>
    %c3_86 = arith.constant 3 : index
    %c0_87 = arith.constant 0 : index
    %c0_88 = arith.constant 0 : index
    %121 = vector.load %arg2[%c3_86, %c0_87, %c0_88] : memref<12x32x32xf32, #tpu.memory_space<vmem>>, vector<1x32x32xf32>
    %122 = vector.shape_cast %121 : vector<1x32x32xf32> to vector<32x32xf32>
    %c4_89 = arith.constant 4 : index
    %c0_90 = arith.constant 0 : index
    %c0_91 = arith.constant 0 : index
    %123 = vector.load %arg2[%c4_89, %c0_90, %c0_91] : memref<12x32x32xf32, #tpu.memory_space<vmem>>, vector<1x32x32xf32>
    %124 = vector.shape_cast %123 : vector<1x32x32xf32> to vector<32x32xf32>
    %125 = math.absf %124 : vector<32x32xf32>
    %126 = math.log %125 : vector<32x32xf32>
    %cst_92 = arith.constant -4.60517025 : f32
    %127 = vector.broadcast %cst_92 : f32 to vector<32x32xf32>
    %128 = arith.subf %127, %126 : vector<32x32xf32>
    %129 = arith.mulf %124, %124 : vector<32x32xf32>
    %130 = arith.mulf %122, %122 : vector<32x32xf32>
    %131 = arith.addf %129, %130 : vector<32x32xf32>
    %cst_93 = arith.constant 1.000000e+04 : f32
    %132 = vector.broadcast %cst_93 : f32 to vector<32x32xf32>
    %133 = arith.mulf %131, %132 : vector<32x32xf32>
    %134 = arith.addf %128, %133 : vector<32x32xf32>
    %cst_94 = arith.constant 5.000000e-01 : f32
    %135 = vector.broadcast %cst_94 : f32 to vector<32x32xf32>
    %136 = arith.subf %134, %135 : vector<32x32xf32>
    %137 = arith.addf %104, %136 : vector<32x32xf32>
    %c3_95 = arith.constant 3 : index
    %c0_96 = arith.constant 0 : index
    %c0_97 = arith.constant 0 : index
    %138 = vector.load %arg3[%c3_95, %c0_96, %c0_97] : memref<12x1x32xf32, #tpu.memory_space<vmem>>, vector<1x1x32xf32>
    %139 = vector.shape_cast %138 : vector<1x1x32xf32> to vector<1x32xf32>
    %c4_98 = arith.constant 4 : index
    %c0_99 = arith.constant 0 : index
    %c0_100 = arith.constant 0 : index
    %140 = vector.load %arg3[%c4_98, %c0_99, %c0_100] : memref<12x1x32xf32, #tpu.memory_space<vmem>>, vector<1x1x32xf32>
    %141 = vector.shape_cast %140 : vector<1x1x32xf32> to vector<1x32xf32>
    %142 = math.absf %141 : vector<1x32xf32>
    %143 = math.log %142 : vector<1x32xf32>
    %cst_101 = arith.constant -4.60517025 : f32
    %144 = vector.broadcast %cst_101 : f32 to vector<1x32xf32>
    %145 = arith.subf %144, %143 : vector<1x32xf32>
    %146 = arith.mulf %141, %141 : vector<1x32xf32>
    %147 = arith.mulf %139, %139 : vector<1x32xf32>
    %148 = arith.addf %146, %147 : vector<1x32xf32>
    %cst_102 = arith.constant 1.000000e+04 : f32
    %149 = vector.broadcast %cst_102 : f32 to vector<1x32xf32>
    %150 = arith.mulf %148, %149 : vector<1x32xf32>
    %151 = arith.addf %145, %150 : vector<1x32xf32>
    %cst_103 = arith.constant 5.000000e-01 : f32
    %152 = vector.broadcast %cst_103 : f32 to vector<1x32xf32>
    %153 = arith.subf %151, %152 : vector<1x32xf32>
    %154 = arith.addf %120, %153 : vector<1x32xf32>
    %c6_104 = arith.constant 6 : index
    %c0_105 = arith.constant 0 : index
    %c0_106 = arith.constant 0 : index
    %155 = vector.load %arg2[%c6_104, %c0_105, %c0_106] : memref<12x32x32xf32, #tpu.memory_space<vmem>>, vector<1x32x32xf32>
    %156 = vector.shape_cast %155 : vector<1x32x32xf32> to vector<32x32xf32>
    %c7_107 = arith.constant 7 : index
    %c0_108 = arith.constant 0 : index
    %c0_109 = arith.constant 0 : index
    %157 = vector.load %arg2[%c7_107, %c0_108, %c0_109] : memref<12x32x32xf32, #tpu.memory_space<vmem>>, vector<1x32x32xf32>
    %158 = vector.shape_cast %157 : vector<1x32x32xf32> to vector<32x32xf32>
    %159 = math.absf %158 : vector<32x32xf32>
    %160 = math.log %159 : vector<32x32xf32>
    %cst_110 = arith.constant -4.60517025 : f32
    %161 = vector.broadcast %cst_110 : f32 to vector<32x32xf32>
    %162 = arith.subf %161, %160 : vector<32x32xf32>
    %163 = arith.mulf %158, %158 : vector<32x32xf32>
    %164 = arith.mulf %156, %156 : vector<32x32xf32>
    %165 = arith.addf %163, %164 : vector<32x32xf32>
    %cst_111 = arith.constant 1.000000e+04 : f32
    %166 = vector.broadcast %cst_111 : f32 to vector<32x32xf32>
    %167 = arith.mulf %165, %166 : vector<32x32xf32>
    %168 = arith.addf %162, %167 : vector<32x32xf32>
    %cst_112 = arith.constant 5.000000e-01 : f32
    %169 = vector.broadcast %cst_112 : f32 to vector<32x32xf32>
    %170 = arith.subf %168, %169 : vector<32x32xf32>
    %171 = arith.addf %137, %170 : vector<32x32xf32>
    %c6_113 = arith.constant 6 : index
    %c0_114 = arith.constant 0 : index
    %c0_115 = arith.constant 0 : index
    %172 = vector.load %arg3[%c6_113, %c0_114, %c0_115] : memref<12x1x32xf32, #tpu.memory_space<vmem>>, vector<1x1x32xf32>
    %173 = vector.shape_cast %172 : vector<1x1x32xf32> to vector<1x32xf32>
    %c7_116 = arith.constant 7 : index
    %c0_117 = arith.constant 0 : index
    %c0_118 = arith.constant 0 : index
    %174 = vector.load %arg3[%c7_116, %c0_117, %c0_118] : memref<12x1x32xf32, #tpu.memory_space<vmem>>, vector<1x1x32xf32>
    %175 = vector.shape_cast %174 : vector<1x1x32xf32> to vector<1x32xf32>
    %176 = math.absf %175 : vector<1x32xf32>
    %177 = math.log %176 : vector<1x32xf32>
    %cst_119 = arith.constant -4.60517025 : f32
    %178 = vector.broadcast %cst_119 : f32 to vector<1x32xf32>
    %179 = arith.subf %178, %177 : vector<1x32xf32>
    %180 = arith.mulf %175, %175 : vector<1x32xf32>
    %181 = arith.mulf %173, %173 : vector<1x32xf32>
    %182 = arith.addf %180, %181 : vector<1x32xf32>
    %cst_120 = arith.constant 1.000000e+04 : f32
    %183 = vector.broadcast %cst_120 : f32 to vector<1x32xf32>
    %184 = arith.mulf %182, %183 : vector<1x32xf32>
    %185 = arith.addf %179, %184 : vector<1x32xf32>
    %cst_121 = arith.constant 5.000000e-01 : f32
    %186 = vector.broadcast %cst_121 : f32 to vector<1x32xf32>
    %187 = arith.subf %185, %186 : vector<1x32xf32>
    %188 = arith.addf %154, %187 : vector<1x32xf32>
    %c9_122 = arith.constant 9 : index
    %c0_123 = arith.constant 0 : index
    %c0_124 = arith.constant 0 : index
    %189 = vector.load %arg2[%c9_122, %c0_123, %c0_124] : memref<12x32x32xf32, #tpu.memory_space<vmem>>, vector<1x32x32xf32>
    %190 = vector.shape_cast %189 : vector<1x32x32xf32> to vector<32x32xf32>
    %c10_125 = arith.constant 10 : index
    %c0_126 = arith.constant 0 : index
    %c0_127 = arith.constant 0 : index
    %191 = vector.load %arg2[%c10_125, %c0_126, %c0_127] : memref<12x32x32xf32, #tpu.memory_space<vmem>>, vector<1x32x32xf32>
    %192 = vector.shape_cast %191 : vector<1x32x32xf32> to vector<32x32xf32>
    %193 = math.absf %192 : vector<32x32xf32>
    %194 = math.log %193 : vector<32x32xf32>
    %cst_128 = arith.constant -4.60517025 : f32
    %195 = vector.broadcast %cst_128 : f32 to vector<32x32xf32>
    %196 = arith.subf %195, %194 : vector<32x32xf32>
    %197 = arith.mulf %192, %192 : vector<32x32xf32>
    %198 = arith.mulf %190, %190 : vector<32x32xf32>
    %199 = arith.addf %197, %198 : vector<32x32xf32>
    %cst_129 = arith.constant 1.000000e+04 : f32
    %200 = vector.broadcast %cst_129 : f32 to vector<32x32xf32>
    %201 = arith.mulf %199, %200 : vector<32x32xf32>
    %202 = arith.addf %196, %201 : vector<32x32xf32>
    %cst_130 = arith.constant 5.000000e-01 : f32
    %203 = vector.broadcast %cst_130 : f32 to vector<32x32xf32>
    %204 = arith.subf %202, %203 : vector<32x32xf32>
    %205 = arith.addf %171, %204 : vector<32x32xf32>
    %c9_131 = arith.constant 9 : index
    %c0_132 = arith.constant 0 : index
    %c0_133 = arith.constant 0 : index
    %206 = vector.load %arg3[%c9_131, %c0_132, %c0_133] : memref<12x1x32xf32, #tpu.memory_space<vmem>>, vector<1x1x32xf32>
    %207 = vector.shape_cast %206 : vector<1x1x32xf32> to vector<1x32xf32>
    %c10_134 = arith.constant 10 : index
    %c0_135 = arith.constant 0 : index
    %c0_136 = arith.constant 0 : index
    %208 = vector.load %arg3[%c10_134, %c0_135, %c0_136] : memref<12x1x32xf32, #tpu.memory_space<vmem>>, vector<1x1x32xf32>
    %209 = vector.shape_cast %208 : vector<1x1x32xf32> to vector<1x32xf32>
    %210 = math.absf %209 : vector<1x32xf32>
    %211 = math.log %210 : vector<1x32xf32>
    %cst_137 = arith.constant -4.60517025 : f32
    %212 = vector.broadcast %cst_137 : f32 to vector<1x32xf32>
    %213 = arith.subf %212, %211 : vector<1x32xf32>
    %214 = arith.mulf %209, %209 : vector<1x32xf32>
    %215 = arith.mulf %207, %207 : vector<1x32xf32>
    %216 = arith.addf %214, %215 : vector<1x32xf32>
    %cst_138 = arith.constant 1.000000e+04 : f32
    %217 = vector.broadcast %cst_138 : f32 to vector<1x32xf32>
    %218 = arith.mulf %216, %217 : vector<1x32xf32>
    %219 = arith.addf %213, %218 : vector<1x32xf32>
    %cst_139 = arith.constant 5.000000e-01 : f32
    %220 = vector.broadcast %cst_139 : f32 to vector<1x32xf32>
    %221 = arith.subf %219, %220 : vector<1x32xf32>
    %222 = arith.addf %188, %221 : vector<1x32xf32>
    %223 = vector.shape_cast %205 : vector<32x32xf32> to vector<1x32x32xf32>
    %cst_140 = arith.constant dense<0.000000e+00> : vector<1xf32>
    %224 = vector.multi_reduction <add>, %223, %cst_140 [1, 2] : vector<1x32x32xf32> to vector<1xf32>
    %225 = vector.shape_cast %224 : vector<1xf32> to vector<1x1x1xf32>
    %226 = vector.extract %225[0, 0, 0] : f32 from vector<1x1x1xf32>
    %227 = vector.broadcast %226 : f32 to vector<1x1xf32>
    %228 = vector.shape_cast %222 : vector<1x32xf32> to vector<1x1x32xf32>
    %cst_141 = arith.constant dense<0.000000e+00> : vector<1xf32>
    %229 = vector.multi_reduction <add>, %228, %cst_141 [1, 2] : vector<1x1x32xf32> to vector<1xf32>
    %230 = vector.shape_cast %229 : vector<1xf32> to vector<1x1x1xf32>
    %231 = vector.extract %230[0, 0, 0] : f32 from vector<1x1x1xf32>
    %232 = vector.broadcast %231 : f32 to vector<1x1xf32>
    %233 = arith.addf %227, %232 : vector<1x1xf32>
    %cst_142 = arith.constant 9.910000e+02 : f32
    %234 = vector.broadcast %cst_142 : f32 to vector<1x1xf32>
    %235 = arith.subf %233, %234 : vector<1x1xf32>
    %cst_143 = arith.constant 2.29779413E-4 : f32
    %236 = vector.broadcast %cst_143 : f32 to vector<1x1xf32>
    %237 = arith.mulf %235, %236 : vector<1x1xf32>
    %238 = tpu.iota {dimensions = array<i32: 1>} : vector<8x32xi32>
    %c2_i32 = arith.constant 2 : i32
    %239 = vector.broadcast %c2_i32 : i32 to vector<8x32xi32>
    %240 = arith.cmpi eq, %238, %239 : vector<8x32xi32>
    %241 = vector.shape_cast %237 : vector<1x1xf32> to vector<1x1xf32>
    %242 = vector.broadcast %241 : vector<1x1xf32> to vector<8x32xf32>
    %243 = arith.select %240, %242, %88 : vector<8x32xi1>, vector<8x32xf32>
    %c0_144 = arith.constant 0 : index
    %c0_145 = arith.constant 0 : index
    %244 = vector.load %arg4[%c0_144, %c0_145] : memref<8x32xf32, #tpu.memory_space<vmem>>, vector<8x32xf32>
    tpu.vector_store %arg4[%c0_144, %c0_145], %243 {strides = array<i32>} : memref<8x32xf32, #tpu.memory_space<vmem>>, vector<8x32xf32>,
    return
  }
  func.func @transform_0(%arg0: i32) -> (i32, i32) {
    %c0_i32 = arith.constant 0 : i32
    %c0_i32_0 = arith.constant 0 : i32
    return %arg0, %c0_i32 : i32, i32
  }
  func.func @transform_1(%arg0: i32) -> (i32, i32, i32) {
    %c0_i32 = arith.constant 0 : i32
    %c0_i32_0 = arith.constant 0 : i32
    %c0_i32_1 = arith.constant 0 : i32
    %c0_i32_2 = arith.constant 0 : i32
    return %c0_i32, %c0_i32_0, %c0_i32_1 : i32, i32, i32
  }
  func.func @transform_2(%arg0: i32) -> (i32, i32, i32) {
    %c0_i32 = arith.constant 0 : i32
    %c0_i32_0 = arith.constant 0 : i32
    %c0_i32_1 = arith.constant 0 : i32
    %c0_i32_2 = arith.constant 0 : i32
    return %c0_i32, %c0_i32_0, %c0_i32_1 : i32, i32, i32
  }
  func.func @transform_3(%arg0: i32) -> (i32, i32) {
    %c0_i32 = arith.constant 0 : i32
    %c0_i32_0 = arith.constant 0 : i32
    return %arg0, %c0_i32 : i32, i32
  }
}

</mosaic_0001>

<bundles_post_ra>
// kernel: tpu_custom_call.1
= control target key start
LH: loop header
LB: loop body
LE: loop exit
PB: predicated region body
PF: predicated region fallthrough
CT: control target
= control target key end

     0   :  { %8 = vsyncpa [#allocation3], 0  ;;  %s1141_s0 = inlined_call_operand.vmem [shape: f32[8,1], index: 0, kind: input, shape index: {}]   ;;  %s1142_s1 = inlined_call_operand.hbm [shape: f32[12,32,32], index: 1, kind: input, shape index: {}]   ;;  %s1143_s2 = inlined_call_operand.vmem [shape: f32[12,1,32], index: 2, kind: input, shape index: {}]   ;;  %s1144_s3 = inlined_call_operand.hbm [shape: f32[8,32], index: 3, kind: output, shape index: {}]  }
   0x1   :  { %9 = vsyncpa [#allocation4], 0  ;;  %s878_s12 = smov [#allocation2]   ;;  %s830_s16 = scalar_lea.hbm %s1142_s1, 6144 }
   0x2   :  { %s17_s13 = sshll.u32 %s878_s12, 4  ;;  %p831_p0 = scmp.ne.s32.totalorder %s1142_s1, %s830_s16  ;;  %s18_s13 = int_to_ptr.vmem [resolvable:$true] %s17_s13 }
   0x3   :  { %p834_p1 = scmp.lt.u32.totalorder %s830_s16, %s1142_s1 }
   0x5   :  { %p836_p2 = pnand %p834_p1, %p831_p0 }
   0x7   :  { %839 = shalt.err (!%p836_p2)
}
   0x8   :  { %s840_s21 = scalar_lea.vmem %s18_s13, 6144  ;;  %p845_p4 = scmp.lt.s32.totalorder %s18_s13, %s18_s13 }
   0x9   :  { %p841_p3 = scmp.ne.s32.totalorder %s18_s13, %s840_s21  ;;  %p846_p5 = scmp.lt.s32.totalorder %s840_s21, %s840_s21 }
   0xb   :  { %p847_p6 = por %p846_p5, %p845_p4 }
   0xd   :  { %p848_p7 = pnand %p847_p6, %p841_p3 }
   0xf   :  { %851 = shalt.err (!%p848_p7)
}
  0x10   :  { %s879_s22 = smov 128   ;;  %s880_s23 = smov 8  }
  0x11   :  { %23 = dma.hbm_to_vmem [thread:$0]  %s1142_s1, 6144, %s18_s13, [#allocation3], %s879_s22, %s879_s22, %s880_s23  }
  0x12   :  { %874 = dma.done.wait [#allocation3], 6144  }
  0x13   :  { %875 = vsyncadd [#allocation3], 4294961152  ;;  %v881_v0 = vmov 0   ;;  %v882_v1 = vmov 0.0|0.0   ;;  %v29_v2 = vld [vmem:[%s1141_s0] sm:$0xff]  ;;  %v69_v3 = vld [vmem:[#allocation2 + $0x80] sm:$0xff] }
  0x14   :  { %785 = vset.pattern.permute.xlu0 %v881_v0  ;;  %755 = vmatprep.subr.bf16.mxu0 %v882_v1  ;;  %v70_v4 = vld [vmem:[#allocation2 + $0x88] sm:$0xff]  ;;  %v74_v5 = vld [vmem:[#allocation2 + $0xa0] sm:$0xff]  ;;  %v455_v8 = vand.u32 2147483647, %v69_v3  ;;  %v471_v9 = vmul.f32 %v69_v3, %v69_v3  ;;  %v71_v25 = vld [vmem:[#allocation2 + $0x90] sm:$0xff]  ;;  %vm883_vm0 = vmmov 0  }
  0x15   :  { %761 = vmatprep.subr.bf16.mxu1 %v882_v1  ;;  %52 = vperm.xlu0 %785, %v29_v2   ;;  %v75_v6 = vld [vmem:[#allocation2 + $0xa8] sm:$0xff]  ;;  %v83_v7 = vld [vmem:[#allocation2 + $0x60] sm:$0xff]  ;;  %v472_v10 = vmul.f32 %v70_v4, %v70_v4  ;;  %v78_v11 = vmul.f32 %v74_v5, %v69_v3  ;;  %v456_v14 = vand.u32 2147483647, %v70_v4  ;;  %v76_v26 = vld [vmem:[#allocation2 + $0xb0] sm:$0xff]  ;;  %v473_v43 = vmul.f32 %v71_v25, %v71_v25  ;;  %s885_s25 = smov [#allocation5]  }
  0x16   :  { %v79_v12 = vmul.f32 %v75_v6, %v70_v4  ;;  %v84_v13 = vld [vmem:[#allocation2 + $0x68] sm:$0xff]  ;;  %v475_v15 = vmul.f32 %v83_v7, %v83_v7  ;;  %v923_v16 = vld [vmem:[#allocation2 + $0x20] sm:$0xff]  ;;  %786 = vlog2.f32 %v455_v8  ;;  %v932_v29 = vld [vmem:[#allocation2 + $0x98] sm:$0xff]  ;;  %v80_v37 = vmul.f32 %v76_v26, %v71_v25  ;;  %s663_s26 = sshll.u32 %s885_s25, 4  ;;  %s664_s26 = int_to_ptr.vmem [resolvable:$true] %s663_s26 }
  0x17   :  { %v476_v17 = vmul.f32 %v84_v13, %v84_v13  ;;  %v421_v18 = vmul.f32 %v923_v16, %v923_v16  ;;  %v87_v19 = vadd.f32 %v83_v7, %v78_v11  ;;  %788 = vlog2.f32 %v456_v14  ;;  %v927_v23 = vld [vmem:[#allocation2] sm:$0xff]  ;;  %v77_v30 = vld [vmem:[#allocation2 + $0xb8] sm:$0xff]  ;;  %v937_v31 = vld [vmem:[%s1143_s2 + $0x1] sm:$0x1]  ;;  %p857_p9 = scmp.lt.s32.totalorder %s664_s26, %s664_s26 }
  0x18   :  { %v88_v20 = vadd.f32 %v84_v13, %v79_v12  ;;  %v479_v21 = vadd.f32 %v475_v15, %v471_v9  ;;  %v405_v24 = vand.u32 2147483647, %v923_v16  ;;  %v425_v28 = vmul.f32 %v927_v23, %v927_v23  ;;  %v48_v32 = vld [vmem:[%s1143_s2] sm:$0x1]  ;;  %v85_v33 = vld [vmem:[#allocation2 + $0x70] sm:$0xff]  ;;  %v86_v38 = vld [vmem:[#allocation2 + $0x78] sm:$0xff] }
  0x19   :  { %v480_v22 = vadd.f32 %v476_v17, %v472_v10  ;;  %v449_v35 = vmul.f32 %v937_v31, %v937_v31  ;;  %v450_v36 = vmul.f32 %v48_v32, %v48_v32  ;;  %v81_v39 = vmul.f32 %v77_v30, %v932_v29  ;;  %v36_v10 = vld [vmem:[#allocation2 + $0x40] sm:$0xff]  ;;  %v673_v11 = vld [vmem:[%s1143_s2 + $0x2] sm:$0x1]  ;;  %v979_v30 = vld [vmem:[%s1143_s2 + $0x4] sm:$0x1] }
  0x1a   :  { %v756_v27 = vpack.c.bf16 %v88_v20, %v87_v19  ;;  %790 = vlog2.f32 %v405_v24  ;;  %v429_v34 = vadd.f32 %v425_v28, %v421_v18  ;;  %v457_v40 = vand.u32 2147483647, %v71_v25  ;;  %v187_v26 = vld [vmem:[#allocation2 + $0xe8] sm:$0xff] }
  0x1b   :  { %v946_v41 = vadd.f32 %v450_v36, %v449_v35  ;;  %v89_v42 = vadd.f32 %v85_v33, %v80_v37  ;;  %v90_v44 = vadd.f32 %v86_v38, %v81_v39  ;;  %v474_v45 = vmul.f32 %v932_v29, %v932_v29  ;;  %v984_v35 = vld [vmem:[%s1143_s2 + $0x3] sm:$0x1]  ;;  %v188_v39 = vld [vmem:[#allocation2 + $0xf0] sm:$0xff] }
  0x1c   :  { %757 = vmatpush3.bf16.msra.mxu0 %v756_v27  ;;  %792 = vlog2.f32 %v457_v40  ;;  %v477_v46 = vmul.f32 %v85_v33, %v85_v33  ;;  %v478_v47 = vmul.f32 %v86_v38, %v86_v38  ;;  %v884_v51 = vmov 0.0   ;;  %v191_v27 = vld [vmem:[#allocation2 + $0x100] sm:$0xff]  ;;  %v193_v40 = vld [vmem:[#allocation2 + $0x110] sm:$0xff] }
  0x1d   :  { %758 = vmatprep.subr.bf16.mxu0 %v882_v1  ;;  %v759_v49 = vpack.c.bf16 %v90_v44, %v89_v42  ;;  %730 = vmatprep.mubr.msk.f32.mxu0 %vm883_vm0, %v884_v51  ;;  %v483_v54 = vmul.f32 10000.0, %v479_v21  ;;  %v484_v57 = vmul.f32 10000.0, %v480_v22  ;;  %v433_v63 = vmul.f32 10000.0, %v429_v34  ;;  %v200_v33 = vld [vmem:[#allocation2 + $0xc0] sm:$0xff]  ;;  %v201_v34 = vld [vmem:[#allocation2 + $0xc8] sm:$0xff] }
  0x1e   :  { %v481_v50 = vadd.f32 %v477_v46, %v473_v43  ;;  %741 = vmatprep.mubr.msk.f32.mxu1 %vm883_vm0, %v884_v51  ;;  %v952_v55 = vadd.f32 %v478_v47, %v474_v45  ;;  %v55_v9 = vlaneseq  ;;  %v37_v12 = vmul.f32 %v36_v10, %v923_v16  ;;  %v186_v16 = vld [vmem:[#allocation2 + $0xe0] sm:$0xff]  ;;  %v189_v46 = vld [vmem:[#allocation2 + $0xf8] sm:$0xff] }
  0x1f   :  { %v47_v14 = vmul.f32 %v673_v11, %v937_v31  ;;  %vm105_vm1 = vcmask 261120   ;;  %v195_v28 = vmul.f32 %v191_v27, %v186_v16  ;;  %v499_v36 = vand.u32 2147483647, %v979_v30  ;;  %v194_v47 = vld [vmem:[#allocation2 + $0x118] sm:$0xff]  ;;  %v310_v27 = vld [vmem:[#allocation2 + $0x120] sm:$0xff] }
  0x20   :  { %v787_v48 = vpop.eup %786  ;;  %760 = vmatpush3.bf16.msra.mxu0 %v759_v49  ;;  %v485_v6 = vmul.f32 10000.0, %v481_v50  ;;  %v56_v13 = vshrl.u32 %v55_v9, 7  ;;  %v42_v15 = vadd.f32 %v927_v23, %v37_v12  ;;  %v192_v23 = vld [vmem:[#allocation2 + $0x108] sm:$0xff]  ;;  %v503_v37 = vmul.f32 %v979_v30, %v979_v30 }
  0x21   :  { %v789_v52 = vpop.eup %788  ;;  %v460_v53 = vmul.f32 0.6931472, %v787_v48  ;;  %767 = vmatprep.subr.bf16.mxu0 %v882_v1  ;;  %v49_v18 = vadd.f32 %v48_v32, %v47_v14  ;;  %v196_v32 = vmul.f32 %v192_v23, %v187_v26  ;;  %v204_v38 = vadd.f32 %v200_v33, %v195_v28  ;;  %v311_v23 = vld [vmem:[#allocation2 + $0x128] sm:$0xff] }
  0x22   :  { %v462_v56 = vmul.f32 0.6931472, %v789_v52  ;;  %v970_v17 = vsub.s32 0, %v56_v13  ;;  %v504_v42 = vmul.f32 %v984_v35, %v984_v35  ;;  %v510_v44 = vand.u32 2147483647, %v186_v16 }
  0x23   :  { %v467_v58 = vsub.f32 -4.6051702, %v460_v53  ;;  %v205_v43 = vadd.f32 %v201_v34, %v196_v32  ;;  %v511_v45 = vand.u32 2147483647, %v187_v26  ;;  %794 = vlog2.f32 %v499_v36  ;;  %v1018_v36 = vld [vmem:[%s1143_s2 + $0x7] sm:$0x1] }
  0x24   :  { %v791_v59 = vpop.eup %790  ;;  %v468_v60 = vsub.f32 -4.6051702, %v462_v56  ;;  %v58_v19 = vrot.slane %v42_v15, %v970_v17  ;;  %v64_v20 = vrot.slane %v49_v18, %v970_v17  ;;  %v526_v48 = vmul.f32 %v186_v16, %v186_v16  ;;  %v203_v56 = vld [vmem:[#allocation2 + $0xd8] sm:$0xff] }
  0x25   :  { %v955_v61 = vadd.f32 %v483_v54, %v467_v58  ;;  %v410_v62 = vmul.f32 0.6931472, %v791_v59  ;;  %v527_v49 = vmul.f32 %v187_v26, %v187_v26  ;;  %v530_v50 = vmul.f32 %v200_v33, %v200_v33 }
  0x26   :  { %v957_v0 = vadd.f32 %v484_v57, %v468_v60  ;;  %v793_v3 = vpop.eup %792  ;;  %v762_v52 = vpack.c.bf16 %v205_v43, %v204_v38  ;;  %796 = vlog2.f32 %v510_v44  ;;  %v531_v53 = vmul.f32 %v201_v34, %v201_v34  ;;  %v1033_v43 = vld [vmem:[%s1143_s2 + $0x9] sm:$0x1] }
  0x27   :  { %v417_v2 = vsub.f32 -4.6051702, %v410_v62  ;;  %v464_v5 = vmul.f32 0.6931472, %v793_v3  ;;  %v197_v54 = vmul.f32 %v193_v40, %v188_v39  ;;  %798 = vlog2.f32 %v511_v45 }
  0x28   :  { %v198_v57 = vmul.f32 %v194_v47, %v189_v46  ;;  %v445_v58 = vand.u32 2147483647, %v937_v31  ;;  %v458_v59 = vand.u32 2147483647, %v932_v29  ;;  %v505_v60 = vadd.f32 %v504_v42, %v503_v37  ;;  %763 = vmatpush3.bf16.msra.mxu1 %v762_v52  ;;  %v1023_v37 = vld [vmem:[%s1143_s2 + $0x6] sm:$0x1] }
  0x29   :  { %v959_v4 = vadd.f32 %v433_v63, %v417_v2  ;;  %v469_v7 = vsub.f32 -4.6051702, %v464_v5  ;;  %764 = vmatprep.subr.bf16.mxu1 %v882_v1  ;;  %v512_v2 = vand.u32 2147483647, %v188_v39  ;;  %v528_v3 = vmul.f32 %v188_v39, %v188_v39  ;;  %v1028_v42 = vld [vmem:[%s1143_s2 + $0xa] sm:$0x1] }
  0x2a   :  { %v207_v63 = vadd.f32 %v203_v56, %v198_v57  ;;  %v529_v5 = vmul.f32 %v189_v46, %v189_v46  ;;  %v533_v11 = vmul.f32 %v203_v56, %v203_v56  ;;  %v691_v12 = vadd.f32 -0.5, %v955_v61  ;;  %v1004_v61 = vld [vmem:[#allocation2 + $0x148] sm:$0xff] }
  0x2b   :  { %v961_v8 = vadd.f32 %v485_v6, %v469_v7  ;;  %v534_v6 = vadd.f32 %v530_v50, %v526_v48  ;;  %v535_v7 = vadd.f32 %v531_v53, %v527_v49  ;;  %v686_v13 = vadd.f32 -0.5, %v959_v4  ;;  %v301_v4 = vld [vmem:[#allocation2 + $0x160] sm:$0xff]  ;;  %v32_v53 = vld [vmem:[#allocation2 + $0x28] sm:$0xff] }
  0x2c   :  { %800 = vlog2.f32 %v458_v59  ;;  %v513_v29 = vand.u32 2147483647, %v189_v46  ;;  %v537_v15 = vadd.f32 %v533_v11, %v529_v5  ;;  %v997_v18 = vadd.f32 -0.5, %v957_v0  ;;  %v302_v0 = vld [vmem:[#allocation2 + $0x168] sm:$0xff]  ;;  %v34_v59 = vld [vmem:[#allocation2 + $0x38] sm:$0xff] }
  0x2d   :  { %802 = vlog2.f32 %v512_v2  ;;  %v1011_v28 = vadd.f32 %v691_v12, %v686_v13  ;;  %v306_v33 = vmul.f32 %v302_v0, %v1004_v61  ;;  %v558_v44 = vmul.f32 %v1018_v36, %v1018_v36  ;;  %v40_v13 = vld [vmem:[#allocation2 + $0x10] sm:$0xff] }
  0x2e   :  { %804 = vlog2.f32 %v445_v58  ;;  %v1008_v26 = vmul.f32 10000.0, %v537_v15  ;;  %v559_v45 = vmul.f32 %v1023_v37, %v1023_v37  ;;  %v554_v49 = vand.u32 2147483647, %v1018_v36  ;;  %v33_v58 = vld [vmem:[#allocation2 + $0x30] sm:$0xff] }
  0x2f   :  { %806 = vlog2.f32 %v513_v29  ;;  %v315_v47 = vadd.f32 %v311_v23, %v306_v33  ;;  %v609_v52 = vand.u32 2147483647, %v1028_v42  ;;  %v407_v29 = vand.u32 2147483647, %v33_v58 }
  0x30   :  { %808 = vlog2.f32 %v554_v49  ;;  %v560_v5 = vadd.f32 %v559_v45, %v558_v44  ;;  %v423_v0 = vmul.f32 %v33_v58, %v33_v58  ;;  %v1058_v49 = vld [vmem:[#allocation2 + $0x158] sm:$0xff]  ;;  %v1061_v58 = vadd.f32 -0.5, %v961_v8 }
  0x31   :  { %810 = vlog2.f32 %v609_v52  ;;  %vm637_vm2 = vcmask 253952  }
  0x94   :  { %v53_v21 = vpop.permute.xlu0 %52 }
  0x95   :  { %v59_v22 = vmul.f32 %v58_v19, %v53_v21  ;;  %v1000_v19 = vmul.f32 10000.0, %v952_v55  ;;  %v538_v21 = vmul.f32 10000.0, %v534_v6  ;;  %v39_v6 = vld [vmem:[#allocation2 + $0x8] sm:$0xff] }
  0x96   :  { %v426_v33 = vmul.f32 %v39_v6, %v39_v6 }
  0x97   :  { %v66_v24 = vadd.f32 %v64_v20, %v59_v22  ;;  %v506_v20 = vmul.f32 10000.0, %v505_v60  ;;  %v539_v22 = vmul.f32 10000.0, %v535_v7  ;;  %v566_v60 = vand.u32 2147483647, %v1004_v61 }
  0x98   :  { %v406_v7 = vand.u32 2147483647, %v32_v53 }
  0x99   :  { %v67_v25 = vmax.f32 %v66_v24, 0.0  ;;  %v1002_v24 = vld [vmem:[#allocation2 + $0x140] sm:$0xff] }
  0x9a   :  { %v305_v55 = vmul.f32 %v301_v4, %v1002_v24  ;;  %v565_v34 = vand.u32 2147483647, %v1002_v24  ;;  %812 = vlog2.f32 %v406_v7 }
  0x9b   :  { %731 = vmatmul.mubr.msk.f32.vlgmr.msra.gmra.mrb[0].mxu0 %vm105_vm1, %v67_v25  ;;  %v795_v25 = vpop.eup %794  ;;  %814 = vlog2.f32 %v407_v29 }
  0x9c   :  { %752 = vmatprep.mubr.msk.f32.mxu0 %vm883_vm0, %v884_v51  ;;  %v202_v51 = vld [vmem:[#allocation2 + $0xd0] sm:$0xff]  ;;  %v797_v32 = vpop.eup %796  ;;  %v314_v40 = vadd.f32 %v310_v27, %v305_v55  ;;  %v501_v48 = vmul.f32 0.6931472, %v795_v25  ;;  %v422_v25 = vmul.f32 %v32_v53, %v32_v53 }
  0x9d   :  { %v206_v62 = vadd.f32 %v202_v51, %v197_v54  ;;  %v532_v10 = vmul.f32 %v202_v51, %v202_v51  ;;  %v799_v38 = vpop.eup %798  ;;  %v515_v39 = vmul.f32 0.6931472, %v797_v32  ;;  %v452_v51 = vmul.f32 10000.0, %v946_v41 }
  0x9e   :  { %v517_v46 = vmul.f32 0.6931472, %v799_v38  ;;  %v768_v56 = vpack.c.bf16 %v315_v47, %v314_v40  ;;  %v502_v57 = vsub.f32 -4.6051702, %v501_v48  ;;  %v801_v2 = vpop.eup %800  ;;  %v1047_v41 = vmul.f32 %v310_v27, %v310_v27 }
  0x9f   :  { %v765_v31 = vpack.c.bf16 %v207_v63, %v206_v62  ;;  %v536_v14 = vadd.f32 %v532_v10, %v528_v3  ;;  %v522_v50 = vsub.f32 -4.6051702, %v515_v39  ;;  %v613_v62 = vmul.f32 %v1028_v42, %v1028_v42  ;;  %v803_v10 = vpop.eup %802 }
  0xa0   :  { %v523_v54 = vsub.f32 -4.6051702, %v517_v46  ;;  %v614_v63 = vmul.f32 %v1033_v43, %v1033_v43  ;;  %769 = vmatpush3.bf16.msra.mxu0 %v768_v56  ;;  %v1049_v3 = vmul.f32 %v311_v23, %v311_v23  ;;  %v805_v15 = vpop.eup %804  ;;  %v507_v4 = vadd.f32 %v506_v20, %v502_v57  ;;  %v1056_v20 = vld [vmem:[#allocation2 + $0x150] sm:$0xff] }
  0xa1   :  { %766 = vmatpush3.bf16.msra.mxu1 %v765_v31  ;;  %v1006_v16 = vmul.f32 10000.0, %v536_v14  ;;  %v542_v11 = vadd.f32 %v538_v21, %v522_v50  ;;  %770 = vmatprep.subr.bf16.mxu0 %v882_v1  ;;  %v41_v31 = vld [vmem:[#allocation2 + $0x18] sm:$0xff]  ;;  %v408_v14 = vand.u32 2147483647, %v34_v59  ;;  %v447_v55 = vmul.f32 0.6931472, %v805_v15  ;;  %v807_v32 = vpop.eup %806 }
  0xa2   :  { %v543_v12 = vadd.f32 %v539_v22, %v523_v54  ;;  %v615_v27 = vadd.f32 %v614_v63, %v613_v62  ;;  %v424_v23 = vmul.f32 %v34_v59, %v34_v59  ;;  %v427_v21 = vmul.f32 %v40_v13, %v40_v13  ;;  %v809_v54 = vpop.eup %808 }
  0xa3   :  { %816 = vlog2.f32 %v408_v14  ;;  %v428_v22 = vmul.f32 %v41_v31, %v41_v31  ;;  %v1052_v38 = vadd.f32 -0.5, %v542_v11  ;;  %v448_v1 = vsub.f32 -4.6051702, %v447_v55  ;;  %v811_v62 = vpop.eup %810 }
  0xa4   :  { %v561_v39 = vmul.f32 10000.0, %v560_v5  ;;  %v466_v40 = vmul.f32 0.6931472, %v801_v2  ;;  %v1054_v44 = vadd.f32 -0.5, %v543_v12  ;;  %v430_v45 = vadd.f32 %v426_v33, %v422_v25  ;;  %v813_v31 = vpop.eup %812  ;;  %v1071_v25 = vld [vmem:[#allocation2 + $0x130] sm:$0xff] }
  0xa5   :  { %v431_v46 = vadd.f32 %v427_v21, %v423_v0  ;;  %v519_v47 = vmul.f32 0.6931472, %v803_v10  ;;  %v453_v48 = vadd.f32 %v452_v51, %v448_v1  ;;  %v432_v50 = vadd.f32 %v428_v22, %v424_v23  ;;  %v1075_v23 = vld [vmem:[#allocation2 + $0x138] sm:$0xff] }
  0xa6   :  { %v470_v52 = vsub.f32 -4.6051702, %v466_v40  ;;  %v521_v53 = vmul.f32 0.6931472, %v807_v32  ;;  %v695_v56 = vadd.f32 -0.5, %v507_v4  ;;  %v616_v57 = vmul.f32 10000.0, %v615_v27 }
  0xa7   :  { %v524_v59 = vsub.f32 -4.6051702, %v519_v47  ;;  %v690_v63 = vadd.f32 -0.5, %v453_v48  ;;  %v556_v2 = vmul.f32 0.6931472, %v809_v54  ;;  %v434_v7 = vmul.f32 10000.0, %v430_v45 }
  0xa8   :  { %v490_v5 = vadd.f32 %v1000_v19, %v470_v52  ;;  %v567_v6 = vand.u32 2147483647, %v1056_v20  ;;  %v611_v51 = vmul.f32 0.6931472, %v811_v62  ;;  %v568_v10 = vand.u32 2147483647, %v1058_v49  ;;  %v815_v19 = vpop.eup %814 }
  0xa9   :  { %818 = vlog2.f32 %v565_v34  ;;  %v557_v11 = vsub.f32 -4.6051702, %v556_v2  ;;  %v435_v12 = vmul.f32 10000.0, %v431_v46  ;;  %v436_v8 = vmul.f32 10000.0, %v432_v50  ;;  %v679_v62 = vld [vmem:[%s1143_s2 + $0x8] sm:$0x1] }
  0xaa   :  { %v525_v13 = vsub.f32 -4.6051702, %v521_v53  ;;  %v509_v29 = vadd.f32 %v695_v56, %v690_v63  ;;  %v612_v14 = vsub.f32 -4.6051702, %v611_v51  ;;  %v544_v15 = vadd.f32 %v1006_v16, %v524_v59 }
  0xab   :  { %820 = vlog2.f32 %v566_v60  ;;  %v562_v4 = vadd.f32 %v561_v39, %v557_v11  ;;  %v412_v0 = vmul.f32 0.6931472, %v813_v31  ;;  %v581_v34 = vmul.f32 %v1002_v24, %v1002_v24 }
  0xac   :  { %822 = vlog2.f32 %v567_v6  ;;  %v617_v27 = vadd.f32 %v616_v57, %v612_v14  ;;  %v414_v32 = vmul.f32 0.6931472, %v815_v19  ;;  %v582_v16 = vmul.f32 %v1004_v61, %v1004_v61 }
  0xad   :  { %v817_v55 = vpop.eup %816  ;;  %824 = vlog2.f32 %v568_v10  ;;  %v700_v33 = vadd.f32 -0.5, %v562_v4  ;;  %v418_v21 = vsub.f32 -4.6051702, %v412_v0  ;;  %v583_v22 = vmul.f32 %v1056_v20, %v1056_v20 }
  0xae   :  { %v416_v60 = vmul.f32 0.6931472, %v817_v55  ;;  %v705_v1 = vadd.f32 -0.5, %v617_v27  ;;  %v419_v39 = vsub.f32 -4.6051702, %v414_v32  ;;  %v584_v24 = vmul.f32 %v1058_v49, %v1058_v49 }
  0xaf   :  { %v587_v40 = vmul.f32 %v1071_v25, %v1071_v25  ;;  %v564_v45 = vadd.f32 %v700_v33, %v509_v29  ;;  %v438_v47 = vadd.f32 %v434_v7, %v418_v21  ;;  %v588_v61 = vmul.f32 %v1075_v23, %v1075_v23 }
  0xb0   :  { %v420_v46 = vsub.f32 -4.6051702, %v416_v60  ;;  %v439_v48 = vadd.f32 %v435_v12, %v419_v39  ;;  %v545_v50 = vadd.f32 %v1008_v26, %v525_v13  ;;  %v589_v52 = vadd.f32 %v1047_v41, %v581_v34 }
  0xb1   :  { %v590_v53 = vadd.f32 %v1049_v3, %v582_v16  ;;  %v619_v54 = vadd.f32 %v705_v1, %v564_v45  ;;  %v687_v57 = vadd.f32 -0.5, %v438_v47  ;;  %v591_v59 = vadd.f32 %v587_v40, %v583_v22 }
  0xb2   :  { %v440_v56 = vadd.f32 %v436_v8, %v420_v46  ;;  %v688_v2 = vadd.f32 -0.5, %v439_v48  ;;  %v694_v6 = vadd.f32 -0.5, %v490_v5  ;;  %v550_v51 = vadd.f32 %v1052_v38, %v1011_v28 }
  0xb3   :  { %v819_v63 = vpop.eup %818  ;;  %v592_v7 = vadd.f32 %v588_v61, %v584_v24  ;;  %v638_v26 = vsel %vm637_vm2, %v619_v54, 0.0  ;;  %v593_v3 = vmul.f32 10000.0, %v589_v52  ;;  %v698_v12 = vadd.f32 -0.5, %v544_v15 }
  0xb4   :  { %v689_v41 = vadd.f32 -0.5, %v440_v56  ;;  %v570_v10 = vmul.f32 0.6931472, %v819_v63  ;;  %639 = vadd.xlane.f32.xlu1 %v638_v26  ;;  %v699_v8 = vadd.f32 -0.5, %v545_v50  ;;  %v594_v13 = vmul.f32 10000.0, %v590_v53 }
  0xb5   :  { %v821_v11 = vpop.eup %820  ;;  %v212_v31 = vmul.f32 %v679_v62, %v1018_v36  ;;  %v496_v14 = vadd.f32 %v997_v18, %v687_v57  ;;  %v595_v4 = vmul.f32 10000.0, %v591_v59  ;;  %v497_v38 = vadd.f32 %v1061_v58, %v688_v2  ;;  %v675_v57 = vld [vmem:[%s1143_s2 + $0x5] sm:$0x1] }
  0xb6   :  { %v823_v29 = vpop.eup %822  ;;  %v572_v5 = vmul.f32 0.6931472, %v821_v11  ;;  %v577_v19 = vsub.f32 -4.6051702, %v570_v10  ;;  %v596_v34 = vmul.f32 10000.0, %v592_v7  ;;  %v498_v27 = vadd.f32 %v694_v6, %v689_v41  ;;  %v303_v11 = vld [vmem:[#allocation2 + $0x170] sm:$0xff] }
  0xb7   :  { %v825_v28 = vpop.eup %824  ;;  %v574_v0 = vmul.f32 0.6931472, %v823_v29  ;;  %v1100_v55 = vadd.f32 %v1023_v37, %v212_v31  ;;  %v551_v36 = vadd.f32 %v1054_v44, %v496_v14  ;;  %v552_v22 = vadd.f32 %v698_v12, %v497_v38  ;;  %v304_v12 = vld [vmem:[#allocation2 + $0x178] sm:$0xff] }
  0xb8   :  { %v576_v15 = vmul.f32 0.6931472, %v825_v28  ;;  %v578_v32 = vsub.f32 -4.6051702, %v572_v5  ;;  %v597_v16 = vadd.f32 %v593_v3, %v577_v19  ;;  %v553_v39 = vadd.f32 %v699_v8, %v498_v27 }
  0xb9   :  { %v579_v33 = vsub.f32 -4.6051702, %v574_v0  ;;  %v95_v59 = vmul.f32 %v675_v57, %v979_v30  ;;  %v307_v30 = vmul.f32 %v303_v11, %v1056_v20 }
  0xba   :  { %v580_v60 = vsub.f32 -4.6051702, %v576_v15  ;;  %v598_v18 = vadd.f32 %v594_v13, %v578_v32  ;;  %v701_v21 = vadd.f32 -0.5, %v597_v16 }
  0xbb   :  { %v599_v1 = vadd.f32 %v595_v4, %v579_v33  ;;  %v98_v62 = vadd.f32 %v984_v35, %v95_v59  ;;  %v308_v35 = vmul.f32 %v304_v12, %v1058_v49  ;;  %v316_v8 = vadd.f32 %v1071_v25, %v307_v30 }
  0xbc   :  { %v600_v24 = vadd.f32 %v596_v34, %v580_v60  ;;  %v702_v58 = vadd.f32 -0.5, %v598_v18  ;;  %v605_v40 = vadd.f32 %v701_v21, %v550_v51  ;;  %v220_v25 = vrot.slane %v1100_v55, %v970_v17 }
  0xbd   :  { %v703_v45 = vadd.f32 -0.5, %v599_v1  ;;  %v103_v63 = vrot.slane %v98_v62, %v970_v17  ;;  %v317_v13 = vadd.f32 %v1075_v23, %v308_v35  ;;  %v653_v55 = vand.u32 127, %v55_v9 }
  0xbe   :  { %v704_v46 = vadd.f32 -0.5, %v600_v24  ;;  %v606_v37 = vadd.f32 %v702_v58, %v551_v36  ;;  %v620_v47 = vsel %vm105_vm1, %v605_v40, 0.0  ;;  %v683_v36 = vld [vmem:[%s1143_s2 + $0xb] sm:$0x1]  ;;  %s852_s2 = scalar_lea.vmem %s664_s26, 128 }
  0xbf   :  { %v607_v61 = vadd.f32 %v703_v45, %v552_v22  ;;  %v771_v31 = vpack.c.bf16 %v317_v13, %v316_v8  ;;  %v322_v60 = vmul.f32 %v683_v36, %v1028_v42  ;;  %vm654_vm3 = vcmp.eq.s32.totalorder %v653_v55, 2  ;;  %p853_p8 = scmp.ne.s32.totalorder %s664_s26, %s852_s2  ;;  %p858_p10 = scmp.lt.s32.totalorder %s852_s2, %s852_s2 }
  0xc0   :  { %v608_v48 = vadd.f32 %v704_v46, %v553_v39  ;;  %v621_v50 = vsel %vm105_vm1, %v606_v37, 0.0 }
  0xc1   :  { %v622_v52 = vadd.f32 %v621_v50, %v620_v47  ;;  %v623_v44 = vsel %vm105_vm1, %v607_v61, 0.0  ;;  %772 = vmatpush3.bf16.msra.mxu0 %v771_v31  ;;  %v325_v1 = vadd.f32 %v1033_v43, %v322_v60  ;;  %p859_p11 = por %p858_p10, %p857_p9 }
  0xc2   :  { %v625_v53 = vsel %vm105_vm1, %v608_v48, 0.0 }
  0xc3   :  { %v624_v54 = vadd.f32 %v623_v44, %v622_v52  ;;  %v330_v24 = vrot.slane %v325_v1, %v970_v17  ;;  %p860_p12 = pnand %p859_p11, %p853_p8 }
  0xc5   :  { %v626_v56 = vadd.f32 %v625_v53, %v624_v54 }
  0xc7   :  { %627 = vadd.xlane.f32.xlu0 %v626_v56 }
 0x141   :  { %v640_v29 = vpop.xlane.xlu1 %639 }
 0x142   :  { %v641_v5 = vrot.slane %v640_v29, 4 }
 0x144   :  { %v642_v4 = vadd.f32 %v641_v5, %v640_v29 }
 0x146   :  { %v643_v38 = vrot.slane %v642_v4, 2 }
 0x148   :  { %v644_v34 = vadd.f32 %v643_v38, %v642_v4 }
 0x14a   :  { %v645_v20 = vrot.slane %v644_v34, 1 }
 0x14c   :  { %v646_v49 = vadd.f32 %v645_v20, %v644_v34 }
 0x154   :  { %v628_v14 = vpop.xlane.xlu0 %627 }
 0x155   :  { %v629_v19 = vrot.slane %v628_v14, 4 }
 0x157   :  { %v630_v28 = vadd.f32 %v629_v19, %v628_v14 }
 0x159   :  { %v631_v0 = vrot.slane %v630_v28, 2 }
 0x15b   :  { %v632_v27 = vadd.f32 %v631_v0, %v630_v28 }
 0x15d   :  { %v633_v15 = vrot.slane %v632_v27, 1 }
 0x15f   :  { %v634_v32 = vadd.f32 %v633_v15, %v632_v27 }
 0x161   :  { %773 = vpush %v634_v32 }
 0x162   :  { %775 = vpush %v646_v49 }
 0x16e   :  { %v175_v2 = vpop.f32.mrb[0].mxu0 }
 0x16f   :  { %v176_v6 = vadd.f32 %v175_v2, %v103_v63  ;;  %v732_v51 = vpop.f32.mrb[1].mxu0 }
 0x171   :  { %v179_v7 = vsub.f32 0.0, %v176_v6 }
 0x173   :  { %v180_v26 = vmul.f32 1.442695, %v179_v7 }
 0x175   :  { %826 = vpow2.f32 %v180_v26 }
 0x17f   :  { %v827_v41 = vpop.eup %826 }
 0x180   :  { %v182_v10 = vadd.f32 1.0, %v827_v41 }
 0x182   :  { %828 = vrcp.f32 %v182_v10 }
 0x18c   :  { %v829_v3 = vpop.eup %828 }
 0x18d   :  { %742 = vmatmul.mubr.msk.f32.vlgmr.msra.gmra.mrb[0].mxu1 %vm105_vm1, %v829_v3 }
 0x192   :  { %s774_s21 = spop %773 }
 0x193   :  { %s776_s24 = spop %775  ;;  %v636_v18 = vstv %s774_s21 }
 0x194   :  { %v648_v21 = vstv %s776_s24 }
 0x195   :  { %v649_v22 = vadd.f32 %v648_v21, %v636_v18 }
 0x197   :  { %v706_v39 = vadd.f32 -991.0, %v649_v22 }
 0x199   :  { %v651_v40 = vmul.f32 0.00022977941, %v706_v39 }
 0x260   :  { %v291_v23 = vpop.f32.mrb[0].mxu1 }
 0x261   :  { %v292_v16 = vadd.f32 %v291_v23, %v220_v25  ;;  %v743_v33 = vpop.f32.mrb[1].mxu1 }
 0x263   :  { %753 = vmatmul.mubr.msk.f32.vlgmr.msra.gmra.mrb[2].mxu0 %vm105_vm1, %v292_v16 }
 0x336   :  { %v401_v58 = vpop.f32.mrb[2].mxu0 }
 0x337   :  { %v402_v45 = vadd.f32 %v401_v58, %v330_v24  ;;  %v754_v46 = vpop.f32.mrb[3].mxu0 }
 0x339   :  { %v655_v37 = vsel %vm654_vm3, %v651_v40, %v402_v45 }
 0x33a   :  { %656 = vst.msk [vmem:[#allocation5] sm:$0xff] %vm105_vm1, %v655_v37 }
 0x33b   :  { %863 = shalt.err (!%p860_p12)
}
 0x33c   :  { %s864_s1 = scalar_lea.hbm %s1144_s3, 128 }
 0x33d   :  { %p865_p13 = scmp.ne.s32.totalorder %s1144_s3, %s864_s1  ;;  %p868_p0 = scmp.lt.u32.totalorder %s864_s1, %s1144_s3 }
 0x33f   :  { %p870_p1 = pnand %p868_p0, %p865_p13 }
 0x341   :  { %873 = shalt.err (!%p870_p1)
}
 0x342   :  { %666 = dma.vmem_to_hbm [thread:$0]  %s664_s26, 128, %s1144_s3, [#allocation4]  }
 0x343   :  { %876 = dma.done.wait [#allocation4], 128  }
 0x344   :  { %877 = vsyncadd [#allocation4], 4294967168 }
 0x345   :  { %670 = vsyncpa [#allocation3], 1 }
 0x346   :  { %671 = vsyncpa [#allocation4], 1 }

</bundles_post_ra>
